<compile_context>
chip_gen: v6e
topology: v6e:2x2x1
jax: 0.10.0
libtpu: 0.0.40
codegen_flags: <defaults>
</compile_context>

<pallas_src>
import functools
import math

import jax
import jax.numpy as jnp
import numpy as np
from jax.experimental import pallas as pl
from jax.experimental.pallas import tpu as pltpu


# --------------------------------------------------------------------------- #
# Kernel 1: ConvFeedForward + instance norm + fused q/k projection + v proj.  #
# --------------------------------------------------------------------------- #
def _proj_kernel(x_ref, f_ref, wff_ref, wqk_ref, wv_ref, bias_ref,
                 ff_ref, q_ref, k_ref, v_ref, *, c_out, cq, mm_dtype):
    x = x_ref[0]                           # (C_in, tl)  f32
    fv = f_ref[0]                          # (C_out, tl) f32
    bias = bias_ref[...]                   # (C_out + 2*Cq + Cv, 1) f32
    b_ff = bias[0:c_out]
    b_qk = bias[c_out:c_out + 2 * cq]
    b_v = bias[c_out + 2 * cq:]

    # ConvFeedForward: 1x1 conv + ReLU (bf16 MXU operands, f32 accumulation).
    ff = jnp.dot(wff_ref[...], x.astype(mm_dtype),
                 preferred_element_type=jnp.float32) + b_ff
    ff = jnp.maximum(ff, 0.0)                                    # (C_out, tl)

    # InstanceNorm1d on the permuted tensor == per-position normalization over
    # channels (no affine, biased variance, eps=1e-5).  Kept in f32.
    mean = jnp.mean(ff, axis=0, keepdims=True)
    var = jnp.mean((ff - mean) ** 2, axis=0, keepdims=True)
    norm = (ff - mean) * jax.lax.rsqrt(var + 1e-5)

    norm_c = norm.astype(mm_dtype)
    qk = jnp.dot(wqk_ref[...], norm_c,
                 preferred_element_type=jnp.float32) + b_qk       # (2*Cq, tl)
    v = jnp.dot(wv_ref[...], fv.astype(mm_dtype),
                preferred_element_type=jnp.float32) + b_v         # decoder: value from f

    ff_ref[0] = ff.astype(ff_ref.dtype)
    q_ref[0] = qk[0:cq].astype(q_ref.dtype)
    k_ref[0] = qk[cq:2 * cq].astype(k_ref.dtype)
    v_ref[0] = v.astype(v_ref.dtype)


# --------------------------------------------------------------------------- #
# Kernel 2: flash-style attention (online softmax over kv tiles) + epilogue.  #
# --------------------------------------------------------------------------- #
def _flash_att_kernel(q_ref, k_ref, v_ref, mcols_ref, x_ref, ff_ref, mq_ref,
                      wo_ref, w1_ref, bias_ref, out_ref,
                      m_sc, l_sc, acc_sc, *, alpha, c_out, mm_dtype):
    ki = pl.program_id(2)

    @pl.when(ki == 0)
    def _():
        m_sc[...] = jnp.full(m_sc.shape, -jnp.inf, dtype=jnp.float32)
        l_sc[...] = jnp.zeros_like(l_sc)
        acc_sc[...] = jnp.zeros_like(acc_sc)

    q = q_ref[0]                           # (Cq, tq)  mm_dtype
    k = k_ref[0]                           # (Cq, tk)  mm_dtype
    v = v_ref[0]                           # (Cv, tk)  mm_dtype
    mcols = mcols_ref[0]                   # (tk, 2)   f32
    scale_col = mcols[:, 0:1]              # bfm / sqrt(Cq)     (tk, 1)
    logb_col = mcols[:, 1:2]               # log(bfm + 1e-6)    (tk, 1)

    # Scores with kv positions on sublanes, query positions on lanes: (tk, tq).
    # Contraction over the channel axis of both operands (no explicit .T).
    s = jax.lax.dot_general(k, q, (((0,), (0,)), ((), ())),
                            preferred_element_type=jnp.float32)
    # == energy * bfm / sqrt(Cq) + log(bfm + 1e-6)  (reference masking quirk kept)
    logits = s * scale_col + logb_col

    # Online softmax over the kv axis (axis 0); all stats are (1, tq), lane-dense.
    m_blk = jnp.max(logits, axis=0, keepdims=True)
    m_new = jnp.maximum(m_sc[...], m_blk)
    corr = jnp.exp(m_sc[...] - m_new)                              # (1, tq)
    p = jnp.exp(logits - m_new)                                    # (tk, tq) f32
    l_sc[...] = corr * l_sc[...] + jnp.sum(p, axis=0, keepdims=True)
    acc_sc[...] = corr * acc_sc[...] + jnp.dot(
        v, p.astype(mm_dtype), preferred_element_type=jnp.float32)  # (Cv, tq)
    m_sc[...] = m_new

    @pl.when(ki == pl.num_programs(2) - 1)
    def _():
        bias = bias_ref[...]               # (2*C_out, 1) f32
        b_o = bias[0:c_out]
        b_1 = bias[c_out:]
        mq = mq_ref[0]                     # (1, tq) padding mask at query columns

        inv_l = pl.reciprocal(l_sc[...], approx=True)
        attn = acc_sc[...] * inv_l                                      # (Cv, tq)
        att_final = jnp.dot(wo_ref[...],
                            jnp.maximum(attn, 0.0).astype(mm_dtype),
                            preferred_element_type=jnp.float32) + b_o   # conv_out
        att_final = att_final * mq

        out = alpha * att_final + ff_ref[0]
        out = jnp.dot(w1_ref[...], out.astype(mm_dtype),
                      preferred_element_type=jnp.float32) + b_1         # conv_1x1
        # TODO(synk): nn.Dropout() modeled as identity (inference/eval semantics).
        out_ref[0] = ((x_ref[0] + out) * mq).astype(out_ref.dtype)


# --------------------------------------------------------------------------- #
# Wrapper                                                                     #
# --------------------------------------------------------------------------- #
def att_module_forward(x, f, mask, params, *, alpha, future_window,
                       q_block=128, kv_block=128, l_block=128,
                       matmul_dtype=jnp.bfloat16):
    B, C_in, L = x.shape
    C_out = params['w_ff'].shape[0]
    Cq = params['w_q'].shape[0]
    Cv = params['w_v'].shape[0]

    assert q_block % 128 == 0 and kv_block % 128 == 0 and l_block % 128 == 0

    # Lane-dense, 128-aligned length: pad L up to a common multiple of the tiles.
    l128 = pl.cdiv(L, 128) * 128
    q_block = min(q_block, l128)
    kv_block = min(kv_block, l128)
    l_block = min(l_block, l128)
    blk_lcm = math.lcm(q_block, kv_block, l_block)
    Lp = pl.cdiv(L, blk_lcm) * blk_lcm
    pad = Lp - L

    m1 = mask[:, 0:1, :].astype(jnp.float32)
    if pad:
        x_p = jnp.pad(x, ((0, 0), (0, 0), (0, pad)))
        f_p = jnp.pad(f, ((0, 0), (0, 0), (0, pad)))
        m1_p = jnp.pad(m1, ((0, 0), (0, 0), (0, pad)))   # padded positions masked out
    else:
        x_p, f_p, m1_p = x, f, m1

    # Bounded-future column mask, its log term and the 1/sqrt(Cq) scale are
    # hoisted out of the kernel and streamed as a small (B, Lp, 2) input.
    col = jnp.arange(Lp)
    future_ok = (col <= (L // 2 + future_window)).astype(jnp.float32)
    bfm = m1_p[:, 0, :] * future_ok                                 # (B, Lp)
    inv_sqrt_cq = 1.0 / math.sqrt(Cq)
    mask_cols = jnp.stack([bfm * inv_sqrt_cq, jnp.log(bfm + 1e-6)], axis=-1)

    # bf16 MXU operands (f32 accumulation); biases stay f32 and are consolidated.
    w_ff = params['w_ff'].astype(matmul_dtype)
    w_qk = jnp.concatenate([params['w_q'], params['w_k']], axis=0).astype(matmul_dtype)
    w_v = params['w_v'].astype(matmul_dtype)
    w_o = params['w_o'].astype(matmul_dtype)
    w_1 = params['w_1'].astype(matmul_dtype)
    bias_proj = jnp.concatenate(
        [params['b_ff'], params['b_q'], params['b_k'], params['b_v']],
        axis=0).astype(jnp.float32)                                  # (C_out+2Cq+Cv, 1)
    bias_out = jnp.concatenate([params['b_o'], params['b_1']],
                               axis=0).astype(jnp.float32)           # (2*C_out, 1)

    # ---- kernel 1: projections ----
    proj_kernel = functools.partial(_proj_kernel, c_out=C_out, cq=Cq,
                                    mm_dtype=matmul_dtype)
    ff, q, k, v = pl.pallas_call(
        proj_kernel,
        out_shape=(jax.ShapeDtypeStruct((B, C_out, Lp), jnp.float32),
                   jax.ShapeDtypeStruct((B, Cq, Lp), matmul_dtype),
                   jax.ShapeDtypeStruct((B, Cq, Lp), matmul_dtype),
                   jax.ShapeDtypeStruct((B, Cv, Lp), matmul_dtype)),
        grid=(B, Lp // l_block),
        in_specs=[
            pl.BlockSpec((1, C_in, l_block), lambda b, i: (b, 0, i)),
            pl.BlockSpec((1, C_out, l_block), lambda b, i: (b, 0, i)),
            pl.BlockSpec((C_out, C_in), lambda b, i: (0, 0)),
            pl.BlockSpec((2 * Cq, C_out), lambda b, i: (0, 0)),
            pl.BlockSpec((Cv, C_out), lambda b, i: (0, 0)),
            pl.BlockSpec((C_out + 2 * Cq + Cv, 1), lambda b, i: (0, 0)),
        ],
        out_specs=(
            pl.BlockSpec((1, C_out, l_block), lambda b, i: (b, 0, i)),
            pl.BlockSpec((1, Cq, l_block), lambda b, i: (b, 0, i)),
            pl.BlockSpec((1, Cq, l_block), lambda b, i: (b, 0, i)),
            pl.BlockSpec((1, Cv, l_block), lambda b, i: (b, 0, i)),
        ),
        compiler_params=pltpu.CompilerParams(
            dimension_semantics=("parallel", "parallel")),
    )(x_p, f_p, w_ff, w_qk, w_v, bias_proj)

    # ---- kernel 2: flash attention + epilogue ----
    att_kernel = functools.partial(_flash_att_kernel, alpha=float(alpha),
                                   c_out=C_out, mm_dtype=matmul_dtype)
    out = pl.pallas_call(
        att_kernel,
        out_shape=jax.ShapeDtypeStruct((B, C_out, Lp), x.dtype),
        grid=(B, Lp // q_block, Lp // kv_block),
        in_specs=[
            pl.BlockSpec((1, Cq, q_block), lambda b, qi, ki: (b, 0, qi)),     # q
            pl.BlockSpec((1, Cq, kv_block), lambda b, qi, ki: (b, 0, ki)),    # k
            pl.BlockSpec((1, Cv, kv_block), lambda b, qi, ki: (b, 0, ki)),    # v
            pl.BlockSpec((1, kv_block, 2), lambda b, qi, ki: (b, ki, 0)),     # mask cols
            pl.BlockSpec((1, C_in, q_block), lambda b, qi, ki: (b, 0, qi)),   # x residual
            pl.BlockSpec((1, C_out, q_block), lambda b, qi, ki: (b, 0, qi)),  # ff residual
            pl.BlockSpec((1, 1, q_block), lambda b, qi, ki: (b, 0, qi)),      # padding mask
            pl.BlockSpec((C_out, Cv), lambda b, qi, ki: (0, 0)),              # w_o
            pl.BlockSpec((C_out, C_out), lambda b, qi, ki: (0, 0)),           # w_1
            pl.BlockSpec((2 * C_out, 1), lambda b, qi, ki: (0, 0)),           # [b_o; b_1]
        ],
        out_specs=pl.BlockSpec((1, C_out, q_block), lambda b, qi, ki: (b, 0, qi)),
        scratch_shapes=[
            pltpu.VMEM((1, q_block), jnp.float32),    # running max
            pltpu.VMEM((1, q_block), jnp.float32),    # running denominator
            pltpu.VMEM((Cv, q_block), jnp.float32),   # output accumulator
        ],
        compiler_params=pltpu.CompilerParams(
            dimension_semantics=("parallel", "parallel", "arbitrary")),
    )(q, k, v, mask_cols, x_p, ff, m1_p, w_o, w_1, bias_out)

    return out[:, :, :L]


# --------------------------------------------------------------------------- #
# Pure-JAX reference (f32) for the correctness check.                         #
# --------------------------------------------------------------------------- #
def att_module_reference(x, f, mask, params, *, alpha, future_window):
    m = mask[:, 0:1, :]
    ff = jnp.maximum(jnp.einsum('oc,bcl->bol', params['w_ff'], x) + params['b_ff'][None], 0.0)
    mean = jnp.mean(ff, axis=1, keepdims=True)
    var = jnp.mean((ff - mean) ** 2, axis=1, keepdims=True)
    norm = (ff - mean) / jnp.sqrt(var + 1e-5)
    q = jnp.einsum('oc,bcl->bol', params['w_q'], norm) + params['b_q'][None]
    k = jnp.einsum('oc,bcl->bol', params['w_k'], norm) + params['b_k'][None]
    v = jnp.einsum('oc,bcl->bol', params['w_v'], f) + params['b_v'][None]
    L = x.shape[-1]
    col = jnp.arange(L)[None, None, :]
    bfm = m * (col <= (L // 2 + future_window)).astype(x.dtype)
    energy = jnp.einsum('bci,bcj->bij', q, k) * bfm
    logits = energy / jnp.float32(math.sqrt(q.shape[1])) + jnp.log(bfm + 1e-6)
    att = jax.nn.softmax(logits, axis=-1)
    attn_out = jnp.einsum('bcj,bij->bci', v, att)
    att_final = (jnp.einsum('oc,bcl->bol', params['w_o'], jnp.maximum(attn_out, 0.0))
                 + params['b_o'][None]) * m
    out = alpha * att_final + ff
    out = jnp.einsum('oc,bcl->bol', params['w_1'], out) + params['b_1'][None]
    return (x + out) * m


if __name__ == "__main__":
    B, C, L = 2, 64, 250          # in_channels == out_channels (required by the residuals)
    r1, r2 = 2, 2
    Cq, Cv = C // r1, C // r2
    alpha = 1.0
    future_window = 16

    key = jax.random.PRNGKey(0)
    ks = jax.random.split(key, 16)

    def init(k, shape, scale=0.1):
        return (scale * jax.random.normal(k, shape)).astype(jnp.float32)

    params = {
        'w_ff': init(ks[0], (C, C)),   'b_ff': init(ks[1], (C, 1)),
        'w_q':  init(ks[2], (Cq, C)),  'b_q':  init(ks[3], (Cq, 1)),
        'w_k':  init(ks[4], (Cq, C)),  'b_k':  init(ks[5], (Cq, 1)),
        'w_v':  init(ks[6], (Cv, C)),  'b_v':  init(ks[7], (Cv, 1)),
        'w_o':  init(ks[8], (C, Cv)),  'b_o':  init(ks[9], (C, 1)),
        'w_1':  init(ks[10], (C, C)),  'b_1':  init(ks[11], (C, 1)),
    }

    x = jax.random.normal(ks[12], (B, C, L), dtype=jnp.float32)
    f = jax.random.normal(ks[13], (B, C, L), dtype=jnp.float32)
    # mask: (B, C, L); first channel is the padding mask (second batch has a padded tail).
    mask = jnp.ones((B, C, L), dtype=jnp.float32)
    mask = mask.at[1, :, 200:].set(0.0)

    out = att_module_forward(x, f, mask, params, alpha=alpha,
                             future_window=future_window,
                             q_block=128, kv_block=128, l_block=128)
    out = jax.block_until_ready(out)

    ref = att_module_reference(x, f, mask, params, alpha=alpha,
                               future_window=future_window)
    # bf16 MXU operands (f32 accumulation) => tolerance loosened vs the f32 reference.
    np.testing.assert_allclose(np.asarray(out), np.asarray(ref), rtol=5e-2, atol=5e-2)

    print("KERNEL_OK")
</pallas_src>

<mosaic_0001>
module attributes {stable_mosaic.version = 11 : i64} {
  func.func @_proj_kernel(%arg0: i32, %arg1: i32, %arg2: memref<1x64x128xf32, #tpu.memory_space<vmem>>, %arg3: memref<1x64x128xf32, #tpu.memory_space<vmem>>, %arg4: memref<64x64xbf16, #tpu.memory_space<vmem>>, %arg5: memref<64x64xbf16, #tpu.memory_space<vmem>>, %arg6: memref<32x64xbf16, #tpu.memory_space<vmem>>, %arg7: memref<160x1xf32, #tpu.memory_space<vmem>>, %arg8: memref<1x64x128xf32, #tpu.memory_space<vmem>>, %arg9: memref<1x32x128xbf16, #tpu.memory_space<vmem>>, %arg10: memref<1x32x128xbf16, #tpu.memory_space<vmem>>, %arg11: memref<1x32x128xbf16, #tpu.memory_space<vmem>>) attributes {dimension_semantics = [#tpu.dimension_semantics<parallel>, #tpu.dimension_semantics<parallel>], iteration_bounds = array<i64: 2, 2>, scalar_prefetch = 0 : i64, scratch_operands = 0 : i64, tpu.core_type = #tpu.core_type<tc>, window_params = [{transform_indices = @transform_0, window_bounds = array<i64: 1, 64, 128>}, {transform_indices = @transform_1, window_bounds = array<i64: 1, 64, 128>}, {pipeline_mode = #tpu.pipeline_mode<synchronous>, transform_indices = @transform_2, window_bounds = array<i64: 64, 64>}, {pipeline_mode = #tpu.pipeline_mode<synchronous>, transform_indices = @transform_3, window_bounds = array<i64: 64, 64>}, {pipeline_mode = #tpu.pipeline_mode<synchronous>, transform_indices = @transform_4, window_bounds = array<i64: 32, 64>}, {pipeline_mode = #tpu.pipeline_mode<synchronous>, transform_indices = @transform_5, window_bounds = array<i64: 160, 1>}, {transform_indices = @transform_6, window_bounds = array<i64: 1, 64, 128>}, {transform_indices = @transform_7, window_bounds = array<i64: 1, 32, 128>}, {transform_indices = @transform_8, window_bounds = array<i64: 1, 32, 128>}, {transform_indices = @transform_9, window_bounds = array<i64: 1, 32, 128>}]} {
    %c0 = arith.constant 0 : index
    %c0_0 = arith.constant 0 : index
    %c0_1 = arith.constant 0 : index
    %0 = vector.load %arg2[%c0, %c0_0, %c0_1] : memref<1x64x128xf32, #tpu.memory_space<vmem>>, vector<1x64x128xf32>
    %1 = vector.shape_cast %0 : vector<1x64x128xf32> to vector<64x128xf32>
    %c0_2 = arith.constant 0 : index
    %c0_3 = arith.constant 0 : index
    %c0_4 = arith.constant 0 : index
    %2 = vector.load %arg3[%c0_2, %c0_3, %c0_4] : memref<1x64x128xf32, #tpu.memory_space<vmem>>, vector<1x64x128xf32>
    %3 = vector.shape_cast %2 : vector<1x64x128xf32> to vector<64x128xf32>
    %c0_5 = arith.constant 0 : index
    %c0_6 = arith.constant 0 : index
    %4 = vector.load %arg7[%c0_5, %c0_6] : memref<160x1xf32, #tpu.memory_space<vmem>>, vector<160x1xf32>
    %5 = vector.extract_strided_slice %4 {offsets = [0, 0], sizes = [64, 1], strides = [1, 1]} : vector<160x1xf32> to vector<64x1xf32>
    %6 = vector.extract_strided_slice %4 {offsets = [64, 0], sizes = [64, 1], strides = [1, 1]} : vector<160x1xf32> to vector<64x1xf32>
    %7 = vector.extract_strided_slice %4 {offsets = [128, 0], sizes = [32, 1], strides = [1, 1]} : vector<160x1xf32> to vector<32x1xf32>
    %c0_7 = arith.constant 0 : index
    %c0_8 = arith.constant 0 : index
    %8 = vector.load %arg4[%c0_7, %c0_8] : memref<64x64xbf16, #tpu.memory_space<vmem>>, vector<64x64xbf16>
    %9 = arith.truncf %1 : vector<64x128xf32> to vector<64x128xbf16>
    %cst = arith.constant dense<0.000000e+00> : vector<64x128xf32>
    %10 = tpu.matmul %8, %9, %cst {dimension_numbers = #tpu.dot_dimension_numbers<[1], [0], [0], [1], [0, 0, 1, 1], [], []>} : vector<64x64xbf16>, vector<64x128xbf16>, vector<64x128xf32> -> vector<64x128xf32>
    %11 = vector.broadcast %5 : vector<64x1xf32> to vector<64x128xf32>
    %12 = arith.addf %10, %11 : vector<64x128xf32>
    %cst_9 = arith.constant 0.000000e+00 : f32
    %13 = vector.broadcast %cst_9 : f32 to vector<64x128xf32>
    %14 = arith.maximumf %12, %13 : vector<64x128xf32>
    %cst_10 = arith.constant dense<0.000000e+00> : vector<128xf32>
    %15 = vector.multi_reduction <add>, %14, %cst_10 [0] : vector<64x128xf32> to vector<128xf32>
    %16 = vector.shape_cast %15 : vector<128xf32> to vector<1x128xf32>
    %cst_11 = arith.constant 6.400000e+01 : f32
    %17 = vector.broadcast %cst_11 : f32 to vector<1x128xf32>
    %18 = arith.divf %16, %17 : vector<1x128xf32>
    %19 = vector.broadcast %18 : vector<1x128xf32> to vector<64x128xf32>
    %20 = arith.subf %14, %19 : vector<64x128xf32>
    %21 = arith.mulf %20, %20 : vector<64x128xf32>
    %cst_12 = arith.constant dense<0.000000e+00> : vector<128xf32>
    %22 = vector.multi_reduction <add>, %21, %cst_12 [0] : vector<64x128xf32> to vector<128xf32>
    %23 = vector.shape_cast %22 : vector<128xf32> to vector<1x128xf32>
    %cst_13 = arith.constant 6.400000e+01 : f32
    %24 = vector.broadcast %cst_13 : f32 to vector<1x128xf32>
    %25 = arith.divf %23, %24 : vector<1x128xf32>
    %26 = vector.broadcast %18 : vector<1x128xf32> to vector<64x128xf32>
    %27 = arith.subf %14, %26 : vector<64x128xf32>
    %cst_14 = arith.constant 9.99999974E-6 : f32
    %28 = vector.broadcast %cst_14 : f32 to vector<1x128xf32>
    %29 = arith.addf %25, %28 : vector<1x128xf32>
    %30 = math.rsqrt %29 : vector<1x128xf32>
    %31 = vector.broadcast %30 : vector<1x128xf32> to vector<64x128xf32>
    %32 = arith.mulf %27, %31 : vector<64x128xf32>
    %33 = arith.truncf %32 : vector<64x128xf32> to vector<64x128xbf16>
    %c0_15 = arith.constant 0 : index
    %c0_16 = arith.constant 0 : index
    %34 = vector.load %arg5[%c0_15, %c0_16] : memref<64x64xbf16, #tpu.memory_space<vmem>>, vector<64x64xbf16>
    %cst_17 = arith.constant dense<0.000000e+00> : vector<64x128xf32>
    %35 = tpu.matmul %34, %33, %cst_17 {dimension_numbers = #tpu.dot_dimension_numbers<[1], [0], [0], [1], [0, 0, 1, 1], [], []>} : vector<64x64xbf16>, vector<64x128xbf16>, vector<64x128xf32> -> vector<64x128xf32>
    %36 = vector.broadcast %6 : vector<64x1xf32> to vector<64x128xf32>
    %37 = arith.addf %35, %36 : vector<64x128xf32>
    %c0_18 = arith.constant 0 : index
    %c0_19 = arith.constant 0 : index
    %38 = vector.load %arg6[%c0_18, %c0_19] : memref<32x64xbf16, #tpu.memory_space<vmem>>, vector<32x64xbf16>
    %39 = arith.truncf %3 : vector<64x128xf32> to vector<64x128xbf16>
    %cst_20 = arith.constant dense<0.000000e+00> : vector<32x128xf32>
    %40 = tpu.matmul %38, %39, %cst_20 {dimension_numbers = #tpu.dot_dimension_numbers<[1], [0], [0], [1], [0, 0, 1, 1], [], []>} : vector<32x64xbf16>, vector<64x128xbf16>, vector<32x128xf32> -> vector<32x128xf32>
    %41 = vector.broadcast %7 : vector<32x1xf32> to vector<32x128xf32>
    %42 = arith.addf %40, %41 : vector<32x128xf32>
    %c0_21 = arith.constant 0 : index
    %c0_22 = arith.constant 0 : index
    %c0_23 = arith.constant 0 : index
    %43 = vector.load %arg8[%c0_21, %c0_22, %c0_23] : memref<1x64x128xf32, #tpu.memory_space<vmem>>, vector<1x64x128xf32>
    %44 = vector.shape_cast %43 : vector<1x64x128xf32> to vector<64x128xf32>
    %45 = vector.shape_cast %14 : vector<64x128xf32> to vector<1x64x128xf32>
    tpu.vector_store %arg8[%c0_21, %c0_22, %c0_23], %45 {strides = array<i32>} : memref<1x64x128xf32, #tpu.memory_space<vmem>>, vector<1x64x128xf32>,
    %46 = vector.extract_strided_slice %37 {offsets = [0, 0], sizes = [32, 128], strides = [1, 1]} : vector<64x128xf32> to vector<32x128xf32>
    %47 = arith.truncf %46 : vector<32x128xf32> to vector<32x128xbf16>
    %c0_24 = arith.constant 0 : index
    %c0_25 = arith.constant 0 : index
    %c0_26 = arith.constant 0 : index
    %48 = vector.load %arg9[%c0_24, %c0_25, %c0_26] : memref<1x32x128xbf16, #tpu.memory_space<vmem>>, vector<1x32x128xbf16>
    %49 = vector.shape_cast %48 : vector<1x32x128xbf16> to vector<32x128xbf16>
    %50 = vector.shape_cast %47 : vector<32x128xbf16> to vector<1x32x128xbf16>
    tpu.vector_store %arg9[%c0_24, %c0_25, %c0_26], %50 {strides = array<i32>} : memref<1x32x128xbf16, #tpu.memory_space<vmem>>, vector<1x32x128xbf16>,
    %51 = vector.extract_strided_slice %37 {offsets = [32, 0], sizes = [32, 128], strides = [1, 1]} : vector<64x128xf32> to vector<32x128xf32>
    %52 = arith.truncf %51 : vector<32x128xf32> to vector<32x128xbf16>
    %c0_27 = arith.constant 0 : index
    %c0_28 = arith.constant 0 : index
    %c0_29 = arith.constant 0 : index
    %53 = vector.load %arg10[%c0_27, %c0_28, %c0_29] : memref<1x32x128xbf16, #tpu.memory_space<vmem>>, vector<1x32x128xbf16>
    %54 = vector.shape_cast %53 : vector<1x32x128xbf16> to vector<32x128xbf16>
    %55 = vector.shape_cast %52 : vector<32x128xbf16> to vector<1x32x128xbf16>
    tpu.vector_store %arg10[%c0_27, %c0_28, %c0_29], %55 {strides = array<i32>} : memref<1x32x128xbf16, #tpu.memory_space<vmem>>, vector<1x32x128xbf16>,
    %56 = arith.truncf %42 : vector<32x128xf32> to vector<32x128xbf16>
    %c0_30 = arith.constant 0 : index
    %c0_31 = arith.constant 0 : index
    %c0_32 = arith.constant 0 : index
    %57 = vector.load %arg11[%c0_30, %c0_31, %c0_32] : memref<1x32x128xbf16, #tpu.memory_space<vmem>>, vector<1x32x128xbf16>
    %58 = vector.shape_cast %57 : vector<1x32x128xbf16> to vector<32x128xbf16>
    %59 = vector.shape_cast %56 : vector<32x128xbf16> to vector<1x32x128xbf16>
    tpu.vector_store %arg11[%c0_30, %c0_31, %c0_32], %59 {strides = array<i32>} : memref<1x32x128xbf16, #tpu.memory_space<vmem>>, vector<1x32x128xbf16>,
    return
  }
  func.func @transform_0(%arg0: i32, %arg1: i32) -> (i32, i32, i32) {
    %c0_i32 = arith.constant 0 : i32
    %c0_i32_0 = arith.constant 0 : i32
    return %arg0, %c0_i32, %arg1 : i32, i32, i32
  }
  func.func @transform_1(%arg0: i32, %arg1: i32) -> (i32, i32, i32) {
    %c0_i32 = arith.constant 0 : i32
    %c0_i32_0 = arith.constant 0 : i32
    return %arg0, %c0_i32, %arg1 : i32, i32, i32
  }
  func.func @transform_2(%arg0: i32, %arg1: i32) -> (i32, i32) {
    %c0_i32 = arith.constant 0 : i32
    %c0_i32_0 = arith.constant 0 : i32
    %c0_i32_1 = arith.constant 0 : i32
    return %c0_i32, %c0_i32_0 : i32, i32
  }
  func.func @transform_3(%arg0: i32, %arg1: i32) -> (i32, i32) {
    %c0_i32 = arith.constant 0 : i32
    %c0_i32_0 = arith.constant 0 : i32
    %c0_i32_1 = arith.constant 0 : i32
    return %c0_i32, %c0_i32_0 : i32, i32
  }
  func.func @transform_4(%arg0: i32, %arg1: i32) -> (i32, i32) {
    %c0_i32 = arith.constant 0 : i32
    %c0_i32_0 = arith.constant 0 : i32
    %c0_i32_1 = arith.constant 0 : i32
    return %c0_i32, %c0_i32_0 : i32, i32
  }
  func.func @transform_5(%arg0: i32, %arg1: i32) -> (i32, i32) {
    %c0_i32 = arith.constant 0 : i32
    %c0_i32_0 = arith.constant 0 : i32
    %c0_i32_1 = arith.constant 0 : i32
    return %c0_i32, %c0_i32_0 : i32, i32
  }
  func.func @transform_6(%arg0: i32, %arg1: i32) -> (i32, i32, i32) {
    %c0_i32 = arith.constant 0 : i32
    %c0_i32_0 = arith.constant 0 : i32
    return %arg0, %c0_i32, %arg1 : i32, i32, i32
  }
  func.func @transform_7(%arg0: i32, %arg1: i32) -> (i32, i32, i32) {
    %c0_i32 = arith.constant 0 : i32
    %c0_i32_0 = arith.constant 0 : i32
    return %arg0, %c0_i32, %arg1 : i32, i32, i32
  }
  func.func @transform_8(%arg0: i32, %arg1: i32) -> (i32, i32, i32) {
    %c0_i32 = arith.constant 0 : i32
    %c0_i32_0 = arith.constant 0 : i32
    return %arg0, %c0_i32, %arg1 : i32, i32, i32
  }
  func.func @transform_9(%arg0: i32, %arg1: i32) -> (i32, i32, i32) {
    %c0_i32 = arith.constant 0 : i32
    %c0_i32_0 = arith.constant 0 : i32
    return %arg0, %c0_i32, %arg1 : i32, i32, i32
  }
}

</mosaic_0001>

<bundles_post_ra>
// kernel: tpu_custom_call.1
= control target key start
LH: loop header
LB: loop body
LE: loop exit
PB: predicated region body
PF: predicated region fallthrough
CT: control target
= control target key end

     0   :  { %s2384_s0 = inlined_call_operand.hbm [shape: f32[2,64,256], index: 0, kind: input, shape index: {}]   ;;  %s2385_s1 = inlined_call_operand.hbm [shape: f32[2,64,256], index: 1, kind: input, shape index: {}]   ;;  %s2386_s2 = inlined_call_operand.vmem [shape: bf16[64,64], index: 2, kind: input, shape index: {}]   ;;  %s2387_s3 = inlined_call_operand.vmem [shape: bf16[64,64], index: 3, kind: input, shape index: {}]   ;;  %s2388_s4 = inlined_call_operand.vmem [shape: bf16[32,64], index: 4, kind: input, shape index: {}]   ;;  %s2389_s5 = inlined_call_operand.vmem [shape: f32[160,1], index: 5, kind: input, shape index: {}]   ;;  %s2390_s6 = inlined_call_operand.hbm [shape: f32[2,64,256], index: 6, kind: output, shape index: {0}]   ;;  %s2391_s7 = inlined_call_operand.hbm [shape: bf16[2,32,256], index: 7, kind: output, shape index: {1}]   ;;  %s2392_s8 = inlined_call_operand.hbm [shape: bf16[2,32,256], index: 8, kind: output, shape index: {2}]   ;;  %s2393_s9 = inlined_call_operand.hbm [shape: bf16[2,32,256], index: 9, kind: output, shape index: {3}]  }
   0x1   :  { %2406 = sst [smem:[#allocation27_spill]] %s2384_s0 }
   0x2   :  { %2407 = sst [smem:[#allocation28_spill]] %s2391_s7 }
   0x3   :  { %2408 = sst [smem:[#allocation29_spill]] %s2392_s8 }
   0x4   :  { %15 = vsyncpa [#allocation3], 0 }
   0x5   :  { %17 = vsyncpa [#allocation3 + $0x1], 0 }
   0x6   :  { %18 = vsyncpa [#allocation6], 0 }
   0x7   :  { %20 = vsyncpa [#allocation6 + $0x1], 0 }
   0x8   :  { %21 = vsyncpa [#allocation4], 0 }
   0x9   :  { %23 = vsyncpa [#allocation4 + $0x1], 0 }
   0xa   :  { %24 = vsyncpa [#allocation9], 0 }
   0xb   :  { %26 = vsyncpa [#allocation9 + $0x1], 0 }
   0xc   :  { %27 = vsyncpa [#allocation12], 0 }
   0xd   :  { %29 = vsyncpa [#allocation12 + $0x1], 0  ;;  %s1902_s30 = smov 0   ;;  %s1904_s10 = smov 0  }
   0xe   :  { %s1906_s11 = smov 0   ;;  %s1908_s12 = smov 0  }
   0xf   :  { %s1910_s13 = smov 0   ;;  %s1912_s14 = smov 0  }
  0x10   :  { %s1914_s15 = smov 0   ;;  %s1916_s16 = smov 0  }
  0x11 LB: > { %2409 = sst [smem:[#allocation18_spill]] %s1807_s30  ;;  %s1943_s17 = sadd.s32 4294967295, %s1835_s16   ;;  %s1835_s16 = sphi %s1916_s16, %s35_s16   ;;  %s1831_s15 = sphi %s1914_s15, %s2437_s15   ;;  %s1827_s14 = sphi %s1912_s14, %s2436_s14   ;;  %s1823_s13 = sphi %s1910_s13, %s2435_s13   ;;  %s1819_s12 = sphi %s1908_s12, %s2434_s12   ;;  %s1815_s11 = sphi %s1906_s11, %s2433_s11   ;;  %s1811_s10 = sphi %s1904_s10, %s2439_s10   ;;  %s1807_s30 = sphi %s1902_s30, %s2438_s30  }
  0x12   : > { %2410 = sst [smem:[#allocation19_spill]] %s1815_s11  ;;  %s2398_s18 = sadd.s32 4294967294, %s1835_s16  }
  0x13   : > { %2411 = sst [smem:[#allocation20_spill]] %s1827_s14  ;;  %s44_s19 = sadd.s32 1, %s1827_s14 }
  0x14   : > { %2412 = sst [smem:[#allocation21_spill]] %s1831_s15  ;;  %s47_s20 = sadd.s32 1, %s1831_s15 }
  0x15   : > { %2413 = sst [smem:[#allocation22_spill]] %s1943_s17  ;;  %p45_p0 = scmp.ge.s32.totalorder %s44_s19, 2 }
  0x16   : > { %s56_s21 = sadd.s32 1, %s1815_s11  ;;  %p63_p1 = scmp.ne.s32.totalorder %s1815_s11, %s1811_s10 }
  0x17   : > { %p64_p2 = scmp.eq.s32.totalorder %s1835_s16, 0  ;;  %s2441_s19 = smov (%p45_p0, %s44_s19), 0 }
  0x18   : > { %2414 = sst [smem:[#allocation23_spill]] %s2441_s19  ;;  %s2443_s20 = smov (!%p45_p0, %s47_s20), %s1831_s15 }
  0x19   : > { %s52_s22 = ssub.s32 %s1827_s14, %s2441_s19  ;;  %p1957_p3 = por %p64_p2, %p63_p1 }
  0x1a   : > { %p49_p4 = scmp.ge.s32.totalorder %s2443_s20, 2  ;;  %p69_p5 = scmp.ne.s32.totalorder %s1811_s10, %s1807_s30 }
  0x1b   : > { %p70_p6 = scmp.eq.s32.totalorder %s1943_s17, 0  ;;  %p207_p7 = scmp.eq.s32.totalorder %s1943_s17, 3 }
  0x1c   : > { %s2445_s20 = smov (%p49_p4, %s2443_s20), 0  ;;  %p213_p10 = scmp.eq.s32.totalorder %s2398_s18, 3 }
  0x1d   : > { %2416 = sst [smem:[#allocation24_spill]] %s2445_s20  ;;  %p1967_p8 = por %p70_p6, %p69_p5 }
  0x1e   : > { %p1971_p9 = por %p207_p7, %p63_p1  ;;  %s51_s26 = ssub.s32 %s1831_s15, %s2445_s20 }
  0x1f   : > { %s53_s27 = sor.u32 %s52_s22, %s51_s26  ;;  %p1979_p12 = por %p213_p10, %p69_p5 }
  0x20   : > { %p54_p11 = scmp.eq.s32.totalorder %s53_s27, 0  ;;  %p1504_p13 = scmp.lt.s32.totalorder %s1835_s16, 4 }
  0x21   : > { %s2419_s28 = scalar_select %p1979_p12, 1, 0 }
  0x22   : > { %s1985_s29 = sand.u32 1, %s1815_s11   ;;  %s1303_s8 = sshll.u32 %s1831_s15, 4 }
  0x23   : > { %2420 = sst [smem:[#allocation25_spill]] %s2419_s28  ;;  %s2402_s30 = sshll.u32 %s1985_s29, 6 }
  0x24   : > { %s1988_s19 = scalar_select %p54_p11, %s1815_s11, %s56_s21  }
  0x25   : > { %s1993_s20 = sadd.s32 %s1827_s14, %s1303_s8  ;;  %s333_s22 = scalar_lea.vmem [#allocation2], %s2402_s30 }
  0x26   : > { %2421 = sst [smem:[#allocation26_spill]] %s1988_s19  ;;  %s341_s26 = sshll.u32 %s333_s22, 4  ;;  %s342_s26 = int_to_ptr.vmem [resolvable:$true] %s341_s26 }
  0x27   : > { %s1304_s27 = sshll.u32 %s1993_s20, 7  ;;  %s2422_s0 = sld [smem:[#allocation27_spill]] }
  0x28   : > { %p2003_p0 = pnand %p1504_p13, %p1957_p3  ;;  %s330_s21 = scalar_lea.sflag [#allocation3], %s1985_s29 }
  0x29   : > { %s1606_s8 = scalar_lea.vmem %s342_s26, 1024  ;;  %s1837_s20 = smov [#allocation2]  }
  0x2a   : > { %p1595_p1 = pneg %p2003_p0  ;;  %p1607_p2 = scmp.ne.s32.totalorder %s342_s26, %s1606_s8 }
  0x2b   : > { %s1611_s22 = sshll.u32 %s1837_s20, 4  ;;  %s1612_s22 = int_to_ptr.vmem [resolvable:$false] %s1611_s22 }
  0x2c   : > { %p1609_p4 = pnand %p1607_p2, %p1595_p1  ;;  %s1613_s18 = scalar_lea.vmem %s1612_s22, 2048 }
  0x2d   : > { %s340_s7 = scalar_lea.hbm %s2422_s0, %s1304_s27  ;;  %p1614_p6 = scmp.lt.s32.totalorder %s342_s26, %s1612_s22 }
  0x2e   : > { %p1610_p5 = pneg %p1609_p4  ;;  %p1615_p3 = scmp.lt.s32.totalorder %s1613_s18, %s1606_s8 }
  0x30   : > { %p1616_p7 = por %p1615_p3, %p1614_p6 }
  0x32   : > { %p1617_p10 = pnand %p1616_p7, %p1610_p5 }
  0x34   : > { %1620 = shalt.err (!%p1617_p10)
}
  0x35   : > { %s1838_s23 = smov 256   ;;  %s1839_s28 = smov 128  }
  0x36   : > { %s1840_s30 = smov 8   ;;  %p1308_p11 = scmp.ge.s32.totalorder %s1835_s16, 1 }
  0x37   : > { %1487 = dma.hbm_to_vmem [thread:$0]  (!%p2003_p0), %s340_s7, 1024, %s342_s26, %s330_s21, %s1838_s23, %s1839_s28, %s1840_s30  }
  0x38   : > { %p371_p13 = scmp.lt.s32.totalorder %s1835_s16, 5  ;;  %s362_s18 = scalar_lea.hbm %s2385_s1, %s1304_s27 }
  0x39   : > { %s2425_s0 = sshll.u32 %s1985_s29, 6  ;;  %s352_s19 = scalar_lea.sflag [#allocation6], %s1985_s29 }
  0x3a   : > { %p2018_p2 = pnand %p1308_p11, %p371_p13  ;;  %s355_s15 = scalar_lea.vmem [#allocation5], %s2425_s0 }
  0x3b   : > { %s363_s14 = sshll.u32 %s355_s15, 4  ;;  %s1841_s7 = smov [#allocation5]   ;;  %s364_s14 = int_to_ptr.vmem [resolvable:$true] %s363_s14 }
  0x3c   : > { %s1634_s11 = scalar_lea.vmem %s364_s14, 1024  ;;  %s1639_s26 = sshll.u32 %s1841_s7, 4  ;;  %s1640_s26 = int_to_ptr.vmem [resolvable:$false] %s1639_s26 }
  0x3d   : > { %p1635_p4 = scmp.ne.s32.totalorder %s364_s14, %s1634_s11  ;;  %s1641_s21 = scalar_lea.vmem %s1640_s26, 2048 }
  0x3e   : > { %p1642_p3 = scmp.lt.s32.totalorder %s364_s14, %s1640_s26  ;;  %p1643_p7 = scmp.lt.s32.totalorder %s1641_s21, %s1634_s11 }
  0x3f   : > { %p1637_p5 = pnand %p1635_p4, %p1595_p1 }
  0x40   : > { %p1644_p10 = por %p1643_p7, %p1642_p3 }
  0x41   : > { %p1638_p6 = pneg %p1637_p5 }
  0x43   : > { %p1645_p11 = pnand %p1644_p10, %p1638_p6 }
  0x45   : > { %1648 = shalt.err (!%p1645_p11)
}
  0x46   : > { %1490 = dma.hbm_to_vmem [thread:$0]  (!%p2003_p0), %s362_s18, 1024, %s364_s14, %s352_s19, %s1838_s23, %s1839_s28, %s1840_s30  }
  0x47   : > { %375 = sbr.rel (%p2018_p2) target bundleno = 637 (0x27d), region = 44  ;;  %s2037_s0 = sand.u32 (!%p2018_p2), 1, %s1811_s10  }
  0x48   : > { %s2040_s15 = sshll.u32 (!%p2018_p2), %s2037_s0, 6  ;;  %s378_s11 = scalar_lea.sflag (!%p2018_p2), [#allocation3], %s2037_s0 }
  0x49   : > { %s381_s29 = scalar_lea.vmem (!%p2018_p2), [#allocation2], %s2040_s15 }
  0x4c   : > { %1786 = dma.done.wait (%p1967_p8), %s378_s11, 1024  }
  0x4d   : > { %1788 = vsyncadd (%p1967_p8), %s378_s11, 4294966272  ;;  %s387_s30 = scalar_lea.sflag [#allocation6], %s2037_s0  ;;  %s2050_s14 = scalar_lea.vmem [#allocation5], %s2040_s15 }
  0x4e   : > { %1790 = dma.done.wait (%p1967_p8), %s387_s30, 1024  }
  0x4f   : > { %1792 = vsyncadd (%p1967_p8), %s387_s30, 4294966272  ;;  %v1842_v0 = vmov 0   ;;  %v452_v1 = vld [vmem:[%s381_s29 + $0x30] sm:$0xff]  ;;  %v453_v2 = vld [vmem:[%s381_s29 + $0x38] sm:$0xff]  ;;  %vm554_vm0 = vcmask 523264   ;;  %s2167_s23 = scalar_lea.vmem [#allocation7], %s2040_s15 }
  0x50   : > { %1579 = vset.pattern.permute.xlu0 %v1842_v0  ;;  %1580 = vset.pattern.permute.xlu1 %v1842_v0  ;;  %v450_v3 = vld [vmem:[%s381_s29 + $0x20] sm:$0xff]  ;;  %v493_v4 = vpack.c.bf16 %v453_v2, %v452_v1  ;;  %v451_v5 = vld [vmem:[%s381_s29 + $0x28] sm:$0xff]  ;;  %v448_v7 = vld [vmem:[%s381_s29 + $0x10] sm:$0xff]  ;;  %s2184_s15 = sshll.u32 %s2037_s0, 4  ;;  %s1035_s26 = sshll.u32 %s2167_s23, 4  ;;  %s2208_s26 = int_to_ptr.vmem [resolvable:$true] %s1035_s26 }
  0x51   : > { %v492_v6 = vpack.c.bf16 %v451_v5, %v450_v3  ;;  %v449_v8 = vld [vmem:[%s381_s29 + $0x18] sm:$0xff]  ;;  %v1581_v9 = vld [vmem:[%s2386_s2] sm:$0xff]   ;;  %v447_v12 = vld [vmem:[%s381_s29 + $0x8] sm:$0xff]  ;;  %s2187_s28 = scalar_lea.vmem [#allocation11], %s2184_s15  ;;  %s1353_s21 = sshll.u32 %s1823_s13, 3 }
  0x52   : > { %1428 = vmatprep.subr.bf16.mxu0 %v493_v4  ;;  %v491_v10 = vpack.c.bf16 %v449_v8, %v448_v7  ;;  %v446_v11 = vld [vmem:[%s381_s29] sm:$0xff]  ;;  %1436 = vmatprep.mubr.msk.bf16.mxu0 %vm554_vm0, %v1581_v9  ;;  %v460_v14 = vld [vmem:[%s2050_s14 + $0x30] sm:$0xff]  ;;  %v461_v15 = vld [vmem:[%s2050_s14 + $0x38] sm:$0xff]  ;;  %s1086_s11 = sshll.u32 %s2187_s28, 4  ;;  %s1049_s29 = sadd.s32 %s1819_s12, %s1353_s21  ;;  %s2210_s11 = int_to_ptr.vmem [resolvable:$true] %s1086_s11 }
  0x53   : > { %1429 = vmatpush3.bf16.msra.mxu0 %v493_v4  ;;  %v490_v13 = vpack.c.bf16 %v447_v12, %v446_v11  ;;  %v462_v16 = vld [vmem:[%s2389_s5] sm:$0xff]  ;;  %v464_v17 = vld [vmem:[%s2389_s5 + $0x10] sm:$0xff]  ;;  %v851_v18 = vpack.c.bf16 %v461_v15, %v460_v14  ;;  %v463_v19 = vld [vmem:[%s2389_s5 + $0x8] sm:$0xff]  ;;  %s2212_s30 = sshll.u32 %s1049_s29, 6  ;;  %s1351_s17 = sshll.u32 %s1823_s13, 4 }
  0x54   : > { %1430 = vmatprep.subr.bf16.mxu0 %v492_v6  ;;  %496 = vperm.xlu0 %1579, %v462_v16   ;;  %v458_v20 = vld [vmem:[%s2050_s14 + $0x20] sm:$0xff]  ;;  %v459_v21 = vld [vmem:[%s2050_s14 + $0x28] sm:$0xff]  ;;  %v465_v22 = vld [vmem:[%s2389_s5 + $0x18] sm:$0xff]  ;;  %s1032_s19 = sadd.s32 %s1819_s12, %s1351_s17  ;;  %s2225_s22 = scalar_lea.hbm %s2393_s9, %s2212_s30 }
  0x55   : > { %506 = vperm.xlu1 %1580, %v464_v17   ;;  %v1582_v23 = vld [vmem:[%s2386_s2 + $0x8] sm:$0xff]   ;;  %v1583_v24 = vld [vmem:[%s2386_s2 + $0x10] sm:$0xff]   ;;  %v850_v26 = vpack.c.bf16 %v459_v21, %v458_v20  ;;  %v457_v27 = vld [vmem:[%s2050_s14 + $0x18] sm:$0xff]  ;;  %s1352_s24 = sshll.u32 %s1032_s19, 7  ;;  %s1006_s18 = scalar_lea.sflag [#allocation4], %s2037_s0 }
  0x56   : > { %v456_v25 = vld [vmem:[%s2050_s14 + $0x10] sm:$0xff]  ;;  %v466_v28 = vld [vmem:[%s2389_s5 + $0x20] sm:$0xff]  ;;  %v467_v29 = vld [vmem:[%s2389_s5 + $0x28] sm:$0xff]  ;;  %s1843_s7 = smov [#allocation7]  }
  0x57   : > { %1431 = vmatpush3.bf16.msra.mxu0 %v492_v6  ;;  %v849_v30 = vpack.c.bf16 %v457_v27, %v456_v25  ;;  %v454_v31 = vld [vmem:[%s2050_s14] sm:$0xff]  ;;  %v455_v32 = vld [vmem:[%s2050_s14 + $0x8] sm:$0xff]  ;;  %v468_v33 = vld [vmem:[%s2389_s5 + $0x30] sm:$0xff]  ;;  %s1649_s14 = scalar_lea.vmem %s2208_s26, 1024  ;;  %s1653_s13 = sshll.u32 %s1843_s7, 4  ;;  %s1654_s13 = int_to_ptr.vmem [resolvable:$false] %s1653_s13 }
  0x58   : > { %1432 = vmatprep.subr.bf16.mxu0 %v491_v10  ;;  %501 = vperm.xlu0 %1579, %v463_v19   ;;  %v1584_v34 = vld [vmem:[%s2386_s2 + $0x18] sm:$0xff]   ;;  %v1585_v36 = vld [vmem:[%s2388_s4] sm:$0xff]   ;;  %v848_v37 = vpack.c.bf16 %v455_v32, %v454_v31  ;;  %v471_v39 = vld [vmem:[%s2389_s5 + $0x48] sm:$0xff]  ;;  %p1650_p8 = scmp.ne.s32.totalorder %s2208_s26, %s1649_s14  ;;  %s1655_s12 = scalar_lea.vmem %s1654_s13, 2048 }
  0x59   : > { %511 = vperm.xlu1 %1580, %v465_v22   ;;  %v469_v35 = vld [vmem:[%s2389_s5 + $0x38] sm:$0xff]  ;;  %v470_v38 = vld [vmem:[%s2389_s5 + $0x40] sm:$0xff]  ;;  %v472_v40 = vld [vmem:[%s2389_s5 + $0x50] sm:$0xff]  ;;  %p1656_p13 = scmp.lt.s32.totalorder %s2208_s26, %s1654_s13  ;;  %p1657_p2 = scmp.lt.s32.totalorder %s1655_s12, %s1649_s14 }
  0x5a   : > { %v1586_v41 = vld [vmem:[%s2388_s4 + $0x8] sm:$0xff]   ;;  %v473_v42 = vld [vmem:[%s2389_s5 + $0x58] sm:$0xff]  ;;  %v474_v43 = vld [vmem:[%s2389_s5 + $0x60] sm:$0xff]  ;;  %p1651_p0 = pnand %p1650_p8, %p1971_p9 }
  0x5b   : > { %1433 = vmatpush3.bf16.msra.mxu0 %v491_v10  ;;  %v475_v44 = vld [vmem:[%s2389_s5 + $0x68] sm:$0xff]  ;;  %v476_v45 = vld [vmem:[%s2389_s5 + $0x70] sm:$0xff]  ;;  %v477_v46 = vld [vmem:[%s2389_s5 + $0x78] sm:$0xff]  ;;  %p1658_p4 = por %p1657_p2, %p1656_p13 }
  0x5c   : > { %1434 = vmatprep.subr.bf16.mxu0 %v490_v13  ;;  %516 = vperm.xlu0 %1579, %v466_v28   ;;  %v478_v47 = vld [vmem:[%s2389_s5 + $0x80] sm:$0xff]  ;;  %v479_v48 = vld [vmem:[%s2389_s5 + $0x88] sm:$0xff]  ;;  %v480_v49 = vld [vmem:[%s2389_s5 + $0x90] sm:$0xff]  ;;  %p1652_p1 = pneg %p1651_p0 }
  0x5d   : > { %521 = vperm.xlu1 %1580, %v467_v29   ;;  %v481_v50 = vld [vmem:[%s2389_s5 + $0x98] sm:$0xff]  ;;  %v1587_v55 = vld [vmem:[%s2387_s3] sm:$0xff]  }
  0x5e   : > { %1452 = vmatprep.mubr.msk.bf16.mxu1 %vm554_vm0, %v1587_v55  ;;  %p1659_p5 = pnand %p1658_p4, %p1652_p1 }
  0x5f   : > { %1435 = vmatpush3.bf16.msra.mxu0 %v490_v13 }
  0x60   : > { %1460 = vmatprep.subr.bf16.mxu0 %v851_v18  ;;  %526 = vperm.xlu0 %1579, %v468_v33  }
  0x61   : > { %531 = vperm.xlu1 %1580, %v469_v35  }
  0x62   : > { %1437 = vmatmul.mubr.msk.bf16.vlgmr.msra.gmra.mxu0 %vm554_vm0, %v1582_v23 }
  0x63   : > { %1461 = vmatpush3.bf16.msra.mxu0 %v851_v18  ;;  %1440 = vmatprep.mubr.msk.bf16.mxu0 %vm554_vm0, %v1583_v24 }
  0x64   : > { %1462 = vmatprep.subr.bf16.mxu0 %v850_v26  ;;  %709 = vperm.xlu0 %1579, %v470_v38  }
  0x65   : > { %714 = vperm.xlu1 %1580, %v471_v39  }
  0x67   : > { %1463 = vmatpush3.bf16.msra.mxu0 %v850_v26 }
  0x68   : > { %1464 = vmatprep.subr.bf16.mxu0 %v849_v30  ;;  %719 = vperm.xlu0 %1579, %v472_v40  }
  0x69   : > { %724 = vperm.xlu1 %1580, %v473_v42  }
  0x6a   : > { %1441 = vmatmul.mubr.msk.bf16.gmra.mxu0 %vm554_vm0, %v1584_v34 }
  0x6b   : > { %1465 = vmatpush3.bf16.msra.mxu0 %v849_v30  ;;  %1468 = vmatprep.mubr.msk.bf16.mxu0 %vm554_vm0, %v1585_v36 }
  0x6c   : > { %1466 = vmatprep.subr.bf16.mxu0 %v848_v37  ;;  %729 = vperm.xlu0 %1579, %v474_v43  }
  0x6d   : > { %734 = vperm.xlu1 %1580, %v475_v44  }
  0x6f   : > { %1467 = vmatpush3.bf16.msra.mxu0 %v848_v37 }
  0x70   : > { %739 = vperm.xlu0 %1579, %v476_v45  }
  0x71   : > { %744 = vperm.xlu1 %1580, %v477_v46  }
  0x72   : > { %1469 = vmatmul.mubr.msk.bf16.vlgmr.msra.gmra.mxu0 %vm554_vm0, %v1586_v41 }
  0x74   : > { %854 = vperm.xlu0 %1579, %v478_v47  }
  0x75   : > { %859 = vperm.xlu1 %1580, %v479_v48  }
  0x78   : > { %864 = vperm.xlu0 %1579, %v480_v49  }
  0x79   : > { %869 = vperm.xlu1 %1580, %v481_v50  }
  0xcf   : > { %v497_v51 = vpop.permute.xlu0 %496 }
  0xd0   : > { %v507_v52 = vpop.permute.xlu1 %506 }
  0xd3   : > { %v502_v53 = vpop.permute.xlu0 %501 }
  0xd4   : > { %v512_v54 = vpop.permute.xlu1 %511 }
  0xd7   : > { %v517_v56 = vpop.permute.xlu0 %516 }
  0xd8   : > { %v522_v57 = vpop.permute.xlu1 %521 }
  0xdb   : > { %v527_v58 = vpop.permute.xlu0 %526 }
  0xdc   : > { %v532_v59 = vpop.permute.xlu1 %531 }
  0xdf   : > { %v2152_v60 = vpop.permute.xlu0 %709 }
  0xe0   : > { %v2154_v61 = vpop.permute.xlu1 %714 }
  0xe3   : > { %v2156_v62 = vpop.permute.xlu0 %719 }
  0xe4   : > { %v2158_v63 = vpop.permute.xlu1 %724 }
  0xe7   : > { %v2160_v1 = vpop.permute.xlu0 %729 }
  0xe8   : > { %v2162_v3 = vpop.permute.xlu1 %734 }
  0xeb   : > { %v2171_v11 = vpop.permute.xlu0 %739 }
  0xec   : > { %v2174_v14 = vpop.permute.xlu1 %744 }
  0xef   : > { %v855_v23 = vpop.permute.xlu0 %854 }
  0xf0   : > { %v860_v27 = vpop.permute.xlu1 %859 }
  0xf3   : > { %v865_v36 = vpop.permute.xlu0 %864 }
  0xf4   : > { %v870_v38 = vpop.permute.xlu1 %869 }
 0x122   : > { %v1438_v0 = vpop.f32.mrf.mxu0 }
 0x123   : > { %v610_v2 = vadd.f32 %v1438_v0, %v507_v52 }
 0x124   : > { %v601_v4 = vpop.f32.mrf.mxu0 }
 0x125   : > { %v2164_v5 = vmax.f32 %v610_v2, 0.0  ;;  %v602_v6 = vadd.f32 %v601_v4, %v497_v51 }
 0x126   : > { %v1439_v7 = vpop.f32.mrf.mxu0 }
 0x127   : > { %939 = vst [vmem:[%s2167_s23 + $0x10] sm:$0xff] %v2164_v5  ;;  %v632_v8 = vmax.f32 %v602_v6, 0.0  ;;  %v613_v9 = vadd.f32 %v1439_v7, %v512_v54 }
 0x128   : > { %v604_v10 = vpop.f32.mrf.mxu0 }
 0x129   : > { %937 = vst [vmem:[%s2167_s23] sm:$0xff] %v632_v8  ;;  %v635_v12 = vmax.f32 %v613_v9, 0.0  ;;  %v605_v13 = vadd.f32 %v604_v10, %v502_v53 }
 0x12a   : > { %v1442_v15 = vpop.f32.mrf.mxu0 }
 0x12b   : > { %940 = vst [vmem:[%s2167_s23 + $0x18] sm:$0xff] %v635_v12  ;;  %v633_v16 = vmax.f32 %v605_v13, 0.0  ;;  %v626_v17 = vadd.f32 %v1442_v15, %v527_v58 }
 0x12c   : > { %v617_v18 = vpop.f32.mrf.mxu0 }
 0x12d   : > { %v640_v19 = vadd.f32 %v633_v16, %v632_v8  ;;  %938 = vst [vmem:[%s2167_s23 + $0x8] sm:$0xff] %v633_v16  ;;  %v638_v20 = vmax.f32 %v626_v17, 0.0  ;;  %v618_v21 = vadd.f32 %v617_v18, %v517_v56 }
 0x12e   : > { %v1443_v22 = vpop.f32.mrf.mxu0 }
 0x12f   : > { %v641_v24 = vadd.f32 %v640_v19, %v2164_v5  ;;  %943 = vst [vmem:[%s2167_s23 + $0x30] sm:$0xff] %v638_v20  ;;  %v636_v25 = vmax.f32 %v618_v21, 0.0  ;;  %v629_v26 = vadd.f32 %v1443_v22, %v532_v59 }
 0x130   : > { %v620_v28 = vpop.f32.mrf.mxu0 }
 0x131   : > { %v642_v29 = vadd.f32 %v641_v24, %v635_v12  ;;  %941 = vst [vmem:[%s2167_s23 + $0x20] sm:$0xff] %v636_v25  ;;  %v639_v30 = vmax.f32 %v629_v26, 0.0  ;;  %v621_v31 = vadd.f32 %v620_v28, %v522_v57 }
 0x132   : > { %v1470_v32 = vpop.f32.mrf.mxu0 }
 0x133   : > { %v643_v33 = vadd.f32 %v642_v29, %v636_v25  ;;  %944 = vst [vmem:[%s2167_s23 + $0x38] sm:$0xff] %v639_v30  ;;  %v637_v34 = vmax.f32 %v621_v31, 0.0  ;;  %v931_v41 = vadd.f32 %v1470_v32, %v865_v36 }
 0x134   : > { %v922_v35 = vpop.f32.mrf.mxu0 }
 0x135   : > { %v644_v37 = vadd.f32 %v643_v33, %v637_v34  ;;  %942 = vst [vmem:[%s2167_s23 + $0x28] sm:$0xff] %v637_v34  ;;  %v923_v45 = vadd.f32 %v922_v35, %v855_v23  ;;  %s2219_s23 = scalar_lea.hbm %s2390_s6, %s1352_s24 }
 0x136   : > { %v1471_v39 = vpop.f32.mrf.mxu0 }
 0x137   : > { %v645_v40 = vadd.f32 %v644_v37, %v638_v20  ;;  %v934_v42 = vadd.f32 %v1471_v39, %v870_v38 }
 0x138   : > { %v925_v43 = vpop.f32.mrf.mxu0 }
 0x139   : > { %v646_v44 = vadd.f32 %v645_v40, %v639_v30  ;;  %v1401_v46 = vpack.c.bf16 %v934_v42, %v931_v41  ;;  %v926_v47 = vadd.f32 %v925_v43, %v860_v27 }
 0x13b   : > { %v647_v48 = vrot.slane %v646_v44, 4  ;;  %1405 = vst [vmem:[%s2187_s28 + $0x8] sm:$0xff] %v1401_v46   ;;  %v1396_v49 = vpack.c.bf16 %v926_v47, %v923_v45  ;;  %v1589_v45 = vld [vmem:[%s2387_s3 + $0x10] sm:$0xff]   ;;  %v1590_v46 = vld [vmem:[%s2387_s3 + $0x18] sm:$0xff]  }
 0x13d   : > { %v648_v50 = vadd.f32 %v647_v48, %v646_v44  ;;  %1397 = vst [vmem:[%s2187_s28] sm:$0xff] %v1396_v49   ;;  %v1588_v44 = vld [vmem:[%s2387_s3 + $0x8] sm:$0xff]  }
 0x13f   : > { %v649_v51 = vrot.slane %v648_v50, 2 }
 0x141   : > { %v650_v52 = vadd.f32 %v649_v51, %v648_v50 }
 0x143   : > { %v651_v53 = vrot.slane %v650_v52, 1 }
 0x145   : > { %v652_v54 = vadd.f32 %v651_v53, %v650_v52 }
 0x147   : > { %v654_v55 = vmul.f32 0.015625, %v652_v54 }
 0x149   : > { %v655_v56 = vsub.f32 %v632_v8, %v654_v55  ;;  %v656_v57 = vsub.f32 %v633_v16, %v654_v55  ;;  %v657_v58 = vsub.f32 %v2164_v5, %v654_v55  ;;  %v658_v59 = vsub.f32 %v635_v12, %v654_v55 }
 0x14a   : > { %v659_v4 = vsub.f32 %v636_v25, %v654_v55  ;;  %v660_v9 = vsub.f32 %v637_v34, %v654_v55  ;;  %v661_v18 = vsub.f32 %v638_v20, %v654_v55  ;;  %v662_v22 = vsub.f32 %v639_v30, %v654_v55 }
 0x14b   : > { %v663_v0 = vmul.f32 %v655_v56, %v655_v56  ;;  %v664_v2 = vmul.f32 %v656_v57, %v656_v57  ;;  %v665_v6 = vmul.f32 %v657_v58, %v657_v58  ;;  %v666_v10 = vmul.f32 %v658_v59, %v658_v59 }
 0x14c   : > { %v667_v15 = vmul.f32 %v659_v4, %v659_v4  ;;  %v668_v19 = vmul.f32 %v660_v9, %v660_v9  ;;  %v669_v8 = vmul.f32 %v661_v18, %v661_v18  ;;  %v670_v16 = vmul.f32 %v662_v22, %v662_v22 }
 0x14d   : > { %v671_v7 = vadd.f32 %v664_v2, %v663_v0 }
 0x14f   : > { %v672_v13 = vadd.f32 %v671_v7, %v665_v6 }
 0x151   : > { %v673_v17 = vadd.f32 %v672_v13, %v666_v10 }
 0x153   : > { %v674_v21 = vadd.f32 %v673_v17, %v667_v15 }
 0x155   : > { %v675_v23 = vadd.f32 %v674_v21, %v668_v19 }
 0x157   : > { %v676_v24 = vadd.f32 %v675_v23, %v669_v8 }
 0x159   : > { %v677_v5 = vadd.f32 %v676_v24, %v670_v16 }
 0x15b   : > { %v678_v12 = vrot.slane %v677_v5, 4 }
 0x15d   : > { %v679_v26 = vadd.f32 %v678_v12, %v677_v5 }
 0x15f   : > { %v680_v27 = vrot.slane %v679_v26, 2 }
 0x161   : > { %v681_v25 = vadd.f32 %v680_v27, %v679_v26 }
 0x163   : > { %v682_v28 = vrot.slane %v681_v25, 1 }
 0x165   : > { %v683_v29 = vadd.f32 %v682_v28, %v681_v25 }
 0x167   : > { %v684_v31 = vmul.f32 0.015625, %v683_v29 }
 0x169   : > { %v685_v32 = vadd.f32 1e-05, %v684_v31 }
 0x16b   : > { %1591 = vrsqrt.f32 %v685_v32 }
 0x178   : > { %v1592_v33 = vpop.eup %1591 }
 0x179   : > { %v693_v34 = vmul.f32 %v1592_v33, %v661_v18  ;;  %v694_v20 = vmul.f32 %v1592_v33, %v662_v22  ;;  %v691_v35 = vmul.f32 %v1592_v33, %v659_v4  ;;  %v692_v36 = vmul.f32 %v1592_v33, %v660_v9 }
 0x17a   : > { %v689_v38 = vmul.f32 %v1592_v33, %v657_v58  ;;  %v690_v39 = vmul.f32 %v1592_v33, %v658_v59  ;;  %v687_v41 = vmul.f32 %v1592_v33, %v655_v56  ;;  %v688_v42 = vmul.f32 %v1592_v33, %v656_v57 }
 0x17b   : > { %v698_v30 = vpack.c.bf16 %v694_v20, %v693_v34  ;;  %v697_v37 = vpack.c.bf16 %v692_v36, %v691_v35 }
 0x17c   : > { %v696_v40 = vpack.c.bf16 %v690_v39, %v689_v38  ;;  %v695_v43 = vpack.c.bf16 %v688_v42, %v687_v41 }
 0x17d   : > { %1444 = vmatprep.subr.bf16.mxu1 %v698_v30 }
 0x17e   : > { %1445 = vmatpush3.bf16.msra.mxu1 %v698_v30 }
 0x17f   : > { %1446 = vmatprep.subr.bf16.mxu1 %v697_v37 }
 0x182   : > { %1447 = vmatpush3.bf16.msra.mxu1 %v697_v37 }
 0x183   : > { %1448 = vmatprep.subr.bf16.mxu1 %v696_v40 }
 0x186   : > { %1449 = vmatpush3.bf16.msra.mxu1 %v696_v40 }
 0x187   : > { %1450 = vmatprep.subr.bf16.mxu1 %v695_v43 }
 0x18a   : > { %1451 = vmatpush3.bf16.msra.mxu1 %v695_v43 }
 0x18d   : > { %1453 = vmatmul.mubr.msk.bf16.vlgmr.msra.gmra.mxu1 %vm554_vm0, %v1588_v44 }
 0x18e   : > { %1456 = vmatprep.mubr.msk.bf16.mxu1 %vm554_vm0, %v1589_v45 }
 0x195   : > { %1457 = vmatmul.mubr.msk.bf16.gmra.mxu1 %vm554_vm0, %v1590_v46 }
 0x196   : > { %1662 = shalt.err (!%p1659_p5)
}
 0x197   : > { %s1663_s21 = scalar_lea.hbm %s2219_s23, 1024  ;;  %s1667_s19 = scalar_lea.hbm %s2390_s6, 4096 }
 0x198   : > { %p1664_p6 = scmp.ne.s32.totalorder %s2219_s23, %s1663_s21  ;;  %p1668_p10 = scmp.lt.s32.totalorder %s2219_s23, %s2390_s6 }
 0x199   : > { %p1669_p11 = scmp.lt.s32.totalorder %s1667_s19, %s1663_s21 }
 0x19a   : > { %p1665_p3 = pnand %p1664_p6, %p1971_p9 }
 0x19b   : > { %p1670_p8 = por %p1669_p11, %p1668_p10 }
 0x19c   : > { %p1666_p7 = pneg %p1665_p3 }
 0x19e   : > { %p1671_p0 = pnand %p1670_p8, %p1666_p7 }
 0x1a0   : > { %1674 = shalt.err (!%p1671_p0)
}
 0x1a1   : > { %s1844_s20 = smov 128   ;;  %s1845_s28 = smov 256  }
 0x1a2   : > { %s1846_s8 = smov 8   ;;  %s1021_s14 = scalar_lea.sflag [#allocation12], %s2037_s0 }
 0x1a3   : > { %1476 = dma.vmem_to_hbm [thread:$0]  (%p1971_p9), %s2208_s26, 1024, %s2219_s23, %s1006_s18, %s1844_s20, %s1845_s28, %s1846_s8  }
 0x1a4   : > { %s1675_s7 = scalar_lea.vmem %s2210_s11, 256  ;;  %s1847_s13 = smov [#allocation11]  }
 0x1a5   : > { %p1676_p1 = scmp.ne.s32.totalorder %s2210_s11, %s1675_s7  ;;  %s1679_s12 = sshll.u32 %s1847_s13, 4  ;;  %s1680_s12 = int_to_ptr.vmem [resolvable:$false] %s1679_s12 }
 0x1a6   : > { %s1681_s21 = scalar_lea.vmem %s1680_s12, 512  ;;  %p1682_p4 = scmp.lt.s32.totalorder %s2210_s11, %s1680_s12 }
 0x1a7   : > { %p1677_p13 = pnand %p1676_p1, %p1971_p9  ;;  %p1683_p5 = scmp.lt.s32.totalorder %s1681_s21, %s1675_s7 }
 0x1a9   : > { %p1678_p2 = pneg %p1677_p13  ;;  %p1684_p6 = por %p1683_p5, %p1682_p4 }
 0x1ab   : > { %p1685_p3 = pnand %p1684_p6, %p1678_p2 }
 0x1ad   : > { %1688 = shalt.err (!%p1685_p3)
}
 0x1ae   : > { %s1689_s26 = scalar_lea.hbm %s2225_s22, 256  ;;  %s1693_s29 = scalar_lea.hbm %s2393_s9, 1024 }
 0x1af   : > { %p1690_p7 = scmp.ne.s32.totalorder %s2225_s22, %s1689_s26  ;;  %p1694_p8 = scmp.lt.s32.totalorder %s2225_s22, %s2393_s9 }
 0x1b0   : > { %p1695_p0 = scmp.lt.s32.totalorder %s1693_s29, %s1689_s26 }
 0x1b1   : > { %p1691_p10 = pnand %p1690_p7, %p1971_p9 }
 0x1b2   : > { %p1696_p1 = por %p1695_p0, %p1694_p8 }
 0x1b3   : > { %p1692_p11 = pneg %p1691_p10 }
 0x1b5   : > { %p1697_p13 = pnand %p1696_p1, %p1692_p11 }
 0x1b7   : > { %1700 = shalt.err (!%p1697_p13)
}
 0x1b8   : > { %s1848_s24 = smov 64   ;;  %s2426_s27 = sld [smem:[#allocation22_spill]] }
 0x1b9   : > { %s1849_s28 = smov 4   ;;  %s430_s8 = scalar_lea.vmem [#allocation8], %s2184_s15 }
 0x1ba   : > { %1479 = dma.vmem_to_hbm [thread:$0]  (%p1971_p9), %s2210_s11, 256, %s2225_s22, %s1021_s14, %s1848_s24, %s1844_s20, %s1849_s28  }
 0x1bb   : > { %s1052_s7 = sshll.u32 %s430_s8, 4  ;;  %s2427_s22 = sld [smem:[#allocation28_spill]]  ;;  %s2283_s7 = int_to_ptr.vmem [resolvable:$true] %s1052_s7 }
 0x1bc   : > { %s1701_s21 = scalar_lea.vmem %s2283_s7, 256  ;;  %s1850_s26 = smov [#allocation8]  }
 0x1bd   : > { %p1702_p2 = scmp.ne.s32.totalorder %s2283_s7, %s1701_s21  ;;  %s1705_s23 = sshll.u32 %s1850_s26, 4  ;;  %s1706_s23 = int_to_ptr.vmem [resolvable:$false] %s1705_s23 }
 0x1be   : > { %s1010_s13 = sand.u32 1, %s2426_s27   ;;  %s1707_s18 = scalar_lea.vmem %s1706_s23, 512 }
 0x1bf   : > { %s2291_s12 = scalar_lea.sflag [#allocation9], %s1010_s13  ;;  %p1703_p4 = pnand %p1702_p2, %p1971_p9 }
 0x1c0   : > { %p1708_p6 = scmp.lt.s32.totalorder %s2283_s7, %s1706_s23  ;;  %p1709_p3 = scmp.lt.s32.totalorder %s1707_s18, %s1701_s21 }
 0x1c1   : > { %s2289_s14 = scalar_lea.hbm %s2427_s22, %s2212_s30  ;;  %p1704_p5 = pneg %p1703_p4 }
 0x1c2   : > { %p1710_p7 = por %p1709_p3, %p1708_p6 }
 0x1c4   : > { %p1711_p10 = pnand %p1710_p7, %p1704_p5 }
 0x24d   : > { %v1454_v47 = vpop.f32.mrf.mxu1 }
 0x24e   : > { %v822_v50 = vadd.f32 %v1454_v47, %v2156_v62 }
 0x24f   : > { %v813_v48 = vpop.f32.mrf.mxu1 }
 0x250   : > { %v814_v53 = vadd.f32 %v813_v48, %v2152_v60 }
 0x251   : > { %v1455_v49 = vpop.f32.mrf.mxu1 }
 0x252   : > { %v825_v51 = vadd.f32 %v1455_v49, %v2158_v63 }
 0x253   : > { %v816_v52 = vpop.f32.mrf.mxu1 }
 0x254   : > { %v1381_v54 = vpack.c.bf16 %v825_v51, %v822_v50  ;;  %v817_v55 = vadd.f32 %v816_v52, %v2154_v61 }
 0x255   : > { %v1458_v56 = vpop.f32.mrf.mxu1 }
 0x256   : > { %1403 = vst [vmem:[%s430_s8 + $0x8] sm:$0xff] %v1381_v54   ;;  %v1376_v62 = vpack.c.bf16 %v817_v55, %v814_v53 }
 0x257   : > { %v829_v63 = vpop.f32.mrf.mxu1 }
 0x258   : > { %1377 = vst [vmem:[%s430_s8] sm:$0xff] %v1376_v62  }
 0x259   : > { %v1459_v57 = vpop.f32.mrf.mxu1 }
 0x25a   : > { %1714 = shalt.err (!%p1711_p10)
}
 0x25b   : > { %s1715_s29 = scalar_lea.hbm %s2289_s14, 256  ;;  %s1719_s27 = scalar_lea.hbm %s2427_s22, 1024 }
 0x25c   : > { %p1716_p11 = scmp.ne.s32.totalorder %s2289_s14, %s1715_s29  ;;  %p1720_p1 = scmp.lt.s32.totalorder %s2289_s14, %s2427_s22 }
 0x25d   : > { %p1721_p13 = scmp.lt.s32.totalorder %s1719_s27, %s1715_s29 }
 0x25e   : > { %p1717_p8 = pnand %p1716_p11, %p1971_p9 }
 0x25f   : > { %p1722_p2 = por %p1721_p13, %p1720_p1 }
 0x260   : > { %p1718_p0 = pneg %p1717_p8 }
 0x262   : > { %p1723_p4 = pnand %p1722_p2, %p1718_p0 }
 0x264   : > { %1726 = shalt.err (!%p1723_p4)
}
 0x265   : > { %1477 = dma.vmem_to_hbm [thread:$0]  (%p1971_p9), %s2283_s7, 256, %s2289_s14, %s2291_s12, %s1848_s24, %s1844_s20, %s1849_s28   ;;  %v838_v60 = vadd.f32 %v1458_v56, %v2171_v11  ;;  %v841_v61 = vadd.f32 %v1459_v57, %v2174_v14  ;;  %v832_v58 = vpop.f32.mrf.mxu1  ;;  %v830_v59 = vadd.f32 %v829_v63, %v2160_v1 }
 0x266   : > { %s437_s0 = scalar_lea.vmem [#allocation10], %s2184_s15  ;;  %v833_v2 = vadd.f32 %v832_v58, %v2162_v3  ;;  %s2428_s21 = sld [smem:[#allocation29_spill]] }
 0x267   : > { %s1069_s11 = sshll.u32 %s437_s0, 4  ;;  %v1391_v0 = vpack.c.bf16 %v841_v61, %v838_v60  ;;  %s1851_s23 = smov [#allocation10]   ;;  %s2322_s11 = int_to_ptr.vmem [resolvable:$true] %s1069_s11 }
 0x268   : > { %v1386_v4 = vpack.c.bf16 %v833_v2, %v830_v59  ;;  %s1727_s15 = scalar_lea.vmem %s2322_s11, 256  ;;  %s1731_s18 = sshll.u32 %s1851_s23, 4  ;;  %s1732_s18 = int_to_ptr.vmem [resolvable:$false] %s1731_s18 }
 0x269   : > { %1404 = vst [vmem:[%s437_s0 + $0x8] sm:$0xff] %v1391_v0   ;;  %p1728_p5 = scmp.ne.s32.totalorder %s2322_s11, %s1727_s15  ;;  %s1733_s29 = scalar_lea.vmem %s1732_s18, 512 }
 0x26a   : > { %1387 = vst [vmem:[%s437_s0] sm:$0xff] %v1386_v4   ;;  %p1734_p7 = scmp.lt.s32.totalorder %s2322_s11, %s1732_s18  ;;  %p1735_p10 = scmp.lt.s32.totalorder %s1733_s29, %s1727_s15 }
 0x26b   : > { %p1729_p6 = pnand %p1728_p5, %p1971_p9 }
 0x26c   : > { %s2328_s26 = scalar_lea.hbm %s2428_s21, %s2212_s30  ;;  %p1736_p11 = por %p1735_p10, %p1734_p7 }
 0x26d   : > { %p1730_p3 = pneg %p1729_p6 }
 0x26f   : > { %p1737_p8 = pnand %p1736_p11, %p1730_p3 }
 0x271   : > { %1740 = shalt.err (!%p1737_p8)
}
 0x272   : > { %s1741_s30 = scalar_lea.hbm %s2328_s26, 256  ;;  %s1745_s27 = scalar_lea.hbm %s2428_s21, 1024 }
 0x273   : > { %p1742_p0 = scmp.ne.s32.totalorder %s2328_s26, %s1741_s30  ;;  %p1746_p2 = scmp.lt.s32.totalorder %s2328_s26, %s2428_s21 }
 0x274   : > { %p1747_p4 = scmp.lt.s32.totalorder %s1745_s27, %s1741_s30 }
 0x275   : > { %p1743_p1 = pnand %p1742_p0, %p1971_p9 }
 0x276   : > { %p1748_p5 = por %p1747_p4, %p1746_p2 }
 0x277   : > { %p1744_p13 = pneg %p1743_p1 }
 0x279   : > { %p1749_p6 = pnand %p1748_p5, %p1744_p13 }
 0x27b   : > { %1752 = shalt.err (!%p1749_p6)
}
 0x27c   : > { %1478 = dma.vmem_to_hbm [thread:$0]  (%p1971_p9), %s2322_s11, 256, %s2328_s26, %s2291_s12, %s1848_s24, %s1844_s20, %s1849_s28  }
 0x27d PF: > { %s2429_s0 = sld [smem:[#allocation18_spill]]  ;;  %p1505_p3 = scmp.ge.s32.totalorder %s1835_s16, 2 }
 0x27f   : > { %p1492_p7 = pnand %p1505_p3, %p1979_p12 }
 0x281   : > { %p1493_p10 = pneg %p1492_p7 }
 0x283   : > { %s1101_s14 = sand.u32 1, %s2429_s0  }
 0x284   : > { %s1102_s15 = scalar_lea.sflag [#allocation4], %s1101_s14 }
 0x285   : > { %1794 = dma.done.wait (%p1493_p10), %s1102_s15, 1024  }
 0x286   : > { %1796 = vsyncadd (%p1493_p10), %s1102_s15, 4294966272  ;;  %s2431_s25 = sadd.s32 4294967294, %s1835_s16  }
 0x287   : > { %s1110_s23 = sand.u32 1, %s2431_s25  }
 0x288   : > { %s1111_s18 = scalar_lea.sflag [#allocation9], %s1110_s23 }
 0x289   : > { %1798 = dma.done.wait (%p1493_p10), %s1111_s18, 512  }
 0x28a   : > { %1800 = vsyncadd (%p1493_p10), %s1111_s18, 4294966784  ;;  %s1129_s29 = scalar_lea.sflag [#allocation12], %s1101_s14 }
 0x28b   : > { %1802 = dma.done.wait (%p1493_p10), %s1129_s29, 256  }
 0x28c   : > { %1804 = vsyncadd (%p1493_p10), %s1129_s29, 4294967040  ;;  %s35_s16 = sadd.s32 1, %s1835_s16   ;;  %s2432_s20 = sld [smem:[#allocation19_spill]] }
 0x28d   : > { %p32_p9 = scmp.ge.s32.totalorder %s35_s16, 6   ;;  %s2433_s11 = sld [smem:[#allocation26_spill]] }
 0x28e   : > { %s2434_s12 = sld [smem:[#allocation20_spill]]  ;;  %s2438_s30 = smov %s1811_s10 }
 0x28f   : > { %s2435_s13 = sld [smem:[#allocation21_spill]]  ;;  %34 = sbr.rel (!%p32_p9) target bundleno = 17 (0x11), region = 151 }
 0x290   : > { %s2436_s14 = sld [smem:[#allocation23_spill]] }
 0x291   : > { %s2437_s15 = sld [smem:[#allocation24_spill]] }
 0x292   : > { %s2439_s10 = smov %s2432_s20 }
 0x294   :  { %1134 = vsyncpa [#allocation3], 1 }
 0x295   :  { %1136 = vsyncpa [#allocation3 + $0x1], 1 }
 0x296   :  { %1137 = vsyncpa [#allocation6], 1 }
 0x297   :  { %1139 = vsyncpa [#allocation6 + $0x1], 1 }
 0x298   :  { %1140 = vsyncpa [#allocation4], 1 }
 0x299   :  { %1142 = vsyncpa [#allocation4 + $0x1], 1 }
 0x29a   :  { %1143 = vsyncpa [#allocation9], 1 }
 0x29b   :  { %1145 = vsyncpa [#allocation9 + $0x1], 1 }
 0x29c   :  { %1146 = vsyncpa [#allocation12], 1 }
 0x29d   :  { %1148 = vsyncpa [#allocation12 + $0x1], 1 }

</bundles_post_ra>
